<compile_context>
chip_gen: v7x
topology: tpu7x:2x2x1
jax: 0.10.0
libtpu: 0.0.40
codegen_flags: <defaults>
</compile_context>

<pallas_src>
import jax
import jax.numpy as jnp
from jax.experimental import pallas as pl
from jax.experimental.pallas import tpu as pltpu


EPS = 1e-10


def l2norm_kernel(x_ref, w_ref, o_ref):
    # x_ref: (1, C, T)   w_ref: (C, 1)   o_ref: (1, C, T)
    x = x_ref[...].astype(jnp.float32)
    # Channel reduction (axis=1). XLU/VPU work is trivially hidden: op is HBM-bound.
    sumsq = jnp.sum(x * x, axis=1, keepdims=True)            # (1, 1, T)
    inv_norm = pl.reciprocal(jnp.sqrt(sumsq) + EPS)           # exact; eps after sqrt (S3FD)
    w = w_ref[...].astype(jnp.float32)                        # (C, 1) -> broadcasts to (1, C, T)
    o_ref[...] = (x * inv_norm * w).astype(o_ref.dtype)


def _vmem_budget():
    """(vmem_limit_bytes, per-step footprint budget) — generation aware."""
    vmem_cap = 128 * 1024 * 1024
    try:
        vmem_cap = pltpu.get_tpu_info().vmem_capacity_bytes
    except Exception:
        pass
    if vmem_cap <= 64 * 1024 * 1024:            # v7x-class: 64 MiB per TensorCore
        return 40 * 1024 * 1024, 10 * 1024 * 1024
    return 64 * 1024 * 1024, 24 * 1024 * 1024   # v5e / v6e: plenty of headroom


def _choose_t(hw, c, itemsize, n, footprint_budget, *, min_steps=8):
    """Pick lane-tile T: divides H*W, multiple of 128 if possible, fits VMEM
    (padding + f32 temps + double buffers), and keeps >= min_steps grid steps."""
    c_pad = -(-c // 8) * 8

    def footprint(t):
        t_pad = -(-t // 128) * 128
        padded = c_pad * t_pad
        # 2x double-buffered input + 2x output at input dtype, plus ~2 f32 temps
        # (the .astype(f32) working copy and the product) materialized in-kernel.
        return padded * (4 * itemsize + 2 * 4)

    cands = [t for t in range(128, hw + 1, 128) if hw % t == 0]
    if not cands:
        cands = [hw]                              # H*W has no multiple-of-128 divisor
    fitting = [t for t in cands if footprint(t) <= footprint_budget]
    if not fitting:
        fitting = [min(cands)]                    # best effort; vmem_limit gives headroom
    good = [t for t in fitting if n * (hw // t) >= min_steps]
    if good:
        return max(good)                          # largest tile that still pipelines
    return min(fitting)                           # maximize steps when min_steps unreachable


def l2norm(x_nchw, weight):
    """x_nchw: (N, C, H, W); weight: (C,). Returns (N, C, H, W)."""
    N, C, H, W = x_nchw.shape
    assert weight.shape == (C,), "weight must have shape (C,)"
    HW = H * W

    x3 = x_nchw.reshape(N, C, HW)                 # free: H, W contiguous in NCHW
    w2 = weight.reshape(C, 1)                     # single small padded VMEM tile

    itemsize = jnp.dtype(x_nchw.dtype).itemsize
    vmem_limit, footprint_budget = _vmem_budget()
    t = _choose_t(HW, C, itemsize, N, footprint_budget)
    grid = (N, HW // t)

    # TODO(synk): for bf16 inputs, accumulate sumsq per channel slab instead of
    # materializing the full f32 upcast, to reduce VMEM temp pressure.
    out = pl.pallas_call(
        l2norm_kernel,
        out_shape=jax.ShapeDtypeStruct((N, C, HW), x_nchw.dtype),
        grid_spec=pltpu.PrefetchScalarGridSpec(
            num_scalar_prefetch=0,
            grid=grid,
            in_specs=[
                pl.BlockSpec((1, C, t), lambda n, h: (n, 0, h)),
                pl.BlockSpec((C, 1), lambda n, h: (0, 0)),
            ],
            out_specs=pl.BlockSpec((1, C, t), lambda n, h: (n, 0, h)),
        ),
        compiler_params=pltpu.CompilerParams(
            dimension_semantics=("parallel", "parallel"),
            vmem_limit_bytes=vmem_limit,
        ),
    )(x3, w2)
    return out.reshape(N, C, H, W)


def l2norm_reference(x_nchw, weight):
    x32 = x_nchw.astype(jnp.float32)
    norm = jnp.sqrt(jnp.sum(x32 * x32, axis=1, keepdims=True)) + EPS
    return (x32 / norm) * weight.reshape(1, -1, 1, 1).astype(jnp.float32)


if __name__ == "__main__":
    key = jax.random.PRNGKey(0)
    N, C, H, W = 2, 4, 16, 16
    scale = 1.0  # L2Norm(n_channels, scale) -> weight initialized to `scale`
    x = jax.random.normal(key, (N, C, H, W), dtype=jnp.float32)
    weight = jnp.full((C,), scale, dtype=jnp.float32)

    out = l2norm(x, weight)
    out = jax.block_until_ready(out)

    ref = l2norm_reference(x, weight)
    assert out.shape == (N, C, H, W)
    assert jnp.allclose(out, ref, atol=1e-5, rtol=1e-5)

    print("KERNEL_OK")
</pallas_src>

<mosaic_0001>
module attributes {stable_mosaic.version = 11 : i64} {
  func.func @l2norm_kernel(%arg0: i32, %arg1: i32, %arg2: memref<1x4x128xf32, #tpu.memory_space<vmem>>, %arg3: memref<4x1xf32, #tpu.memory_space<vmem>>, %arg4: memref<1x4x128xf32, #tpu.memory_space<vmem>>) attributes {dimension_semantics = [#tpu.dimension_semantics<parallel>, #tpu.dimension_semantics<parallel>], iteration_bounds = array<i64: 2, 2>, scalar_prefetch = 0 : i64, scratch_operands = 0 : i64, tpu.core_type = #tpu.core_type<tc>, window_params = [{transform_indices = @transform_0, window_bounds = array<i64: 1, 4, 128>}, {pipeline_mode = #tpu.pipeline_mode<synchronous>, transform_indices = @transform_1, window_bounds = array<i64: 4, 1>}, {transform_indices = @transform_2, window_bounds = array<i64: 1, 4, 128>}]} {
    %c0 = arith.constant 0 : index
    %c0_0 = arith.constant 0 : index
    %c0_1 = arith.constant 0 : index
    %0 = vector.load %arg2[%c0, %c0_0, %c0_1] : memref<1x4x128xf32, #tpu.memory_space<vmem>>, vector<1x4x128xf32>
    %1 = arith.mulf %0, %0 : vector<1x4x128xf32>
    %cst = arith.constant dense<0.000000e+00> : vector<1x128xf32>
    %2 = vector.multi_reduction <add>, %1, %cst [1] : vector<1x4x128xf32> to vector<1x128xf32>
    %3 = vector.shape_cast %2 : vector<1x128xf32> to vector<1x1x128xf32>
    %4 = math.sqrt %3 : vector<1x1x128xf32>
    %cst_2 = arith.constant 1.000000e-10 : f32
    %5 = vector.broadcast %cst_2 : f32 to vector<1x1x128xf32>
    %6 = arith.addf %4, %5 : vector<1x1x128xf32>
    %7 = tpu.reciprocal %6 : vector<1x1x128xf32> -> vector<1x1x128xf32>
    %c0_3 = arith.constant 0 : index
    %c0_4 = arith.constant 0 : index
    %8 = vector.load %arg3[%c0_3, %c0_4] : memref<4x1xf32, #tpu.memory_space<vmem>>, vector<4x1xf32>
    %9 = vector.broadcast %7 : vector<1x1x128xf32> to vector<1x4x128xf32>
    %10 = arith.mulf %0, %9 : vector<1x4x128xf32>
    %11 = vector.shape_cast %8 : vector<4x1xf32> to vector<1x4x1xf32>
    %12 = vector.broadcast %11 : vector<1x4x1xf32> to vector<1x4x128xf32>
    %13 = arith.mulf %10, %12 : vector<1x4x128xf32>
    %c0_5 = arith.constant 0 : index
    %c0_6 = arith.constant 0 : index
    %c0_7 = arith.constant 0 : index
    %14 = vector.load %arg4[%c0_5, %c0_6, %c0_7] : memref<1x4x128xf32, #tpu.memory_space<vmem>>, vector<1x4x128xf32>
    tpu.vector_store %arg4[%c0_5, %c0_6, %c0_7], %13 {strides = array<i32>} : memref<1x4x128xf32, #tpu.memory_space<vmem>>, vector<1x4x128xf32>,
    return
  }
  func.func @transform_0(%arg0: i32, %arg1: i32) -> (i32, i32, i32) {
    %c0_i32 = arith.constant 0 : i32
    %c0_i32_0 = arith.constant 0 : i32
    return %arg0, %c0_i32, %arg1 : i32, i32, i32
  }
  func.func @transform_1(%arg0: i32, %arg1: i32) -> (i32, i32) {
    %c0_i32 = arith.constant 0 : i32
    %c0_i32_0 = arith.constant 0 : i32
    %c0_i32_1 = arith.constant 0 : i32
    return %c0_i32, %c0_i32_0 : i32, i32
  }
  func.func @transform_2(%arg0: i32, %arg1: i32) -> (i32, i32, i32) {
    %c0_i32 = arith.constant 0 : i32
    %c0_i32_0 = arith.constant 0 : i32
    return %arg0, %c0_i32, %arg1 : i32, i32, i32
  }
}

</mosaic_0001>

<bundles_post_ra>
// kernel: tpu_custom_call.1
= control target key start
LH: loop header
LB: loop body
LE: loop exit
PB: predicated region body
PF: predicated region fallthrough
CT: control target
= control target key end

     0   :  { %s864_s0 = inlined_call_operand.hbm [shape: f32[2,4,256], index: 0, kind: input, shape index: {}]   ;;  %s865_s1 = inlined_call_operand.hbm [shape: f32[4,1], index: 1, kind: input, shape index: {}]   ;;  %s866_s2 = inlined_call_operand.hbm [shape: f32[2,4,256], index: 2, kind: output, shape index: {}]  }
   0x1   :  { %873 = sst [smem:[#allocation13_spill]] %s865_s1 }
   0x2   :  { %7 = vsyncpa [#allocation3], 0 }
   0x3   :  { %9 = vsyncpa [#allocation3 + $0x1], 0 }
   0x4   :  { %10 = vsyncpa [#allocation6], 0 }
   0x5   :  { %11 = vsyncpa [#allocation4], 0 }
   0x6   :  { %13 = vsyncpa [#allocation4 + $0x1], 0  ;;  %s622_s9 = smov 0   ;;  %s624_s10 = smov 0  }
   0x7   :  { %s626_s11 = smov 0   ;;  %s628_s12 = smov 0  }
   0x8   :  { %s630_s13 = smov 0   ;;  %s632_s14 = smov 0  }
   0x9   :  { %s634_s15 = smov 0   ;;  %s636_s16 = smov 0  }
   0xa LB: > { %s329_s17 = sadd.s32 4294967295, %s601_s16   ;;  %s330_s18 = sadd.s32 4294967294, %s601_s16   ;;  %s601_s16 = sphi %s636_s16, %s19_s16   ;;  %s597_s15 = sphi %s634_s15, %s899_s15   ;;  %s593_s14 = sphi %s632_s14, %s898_s14   ;;  %s589_s13 = sphi %s630_s13, %s897_s13   ;;  %s585_s12 = sphi %s628_s12, %s896_s12   ;;  %s581_s11 = sphi %s626_s11, %s895_s11   ;;  %s577_s10 = sphi %s624_s10, %s894_s10   ;;  %s573_s9 = sphi %s622_s9, %s893_s9  }
   0xb   : > { %p53_p0 = scmp.ne.s32.totalorder %s577_s10, %s573_s9  ;;  %p666_p1 = scmp.eq.s32.totalorder %s329_s17, 0 }
   0xc   : > { %p670_p2 = scmp.eq.s32.totalorder %s329_s17, 3  ;;  %p106_p3 = scmp.eq.s32.totalorder %s330_s18, 3 }
   0xd   : > { %s874_s19 = scalar_select %p666_p1, 1, 0 }
   0xe   : > { %s875_s20 = scalar_select %p670_p2, 1, 0 }
   0xf   : > { %p676_p4 = por %p666_p1, %p53_p0  ;;  %p331_p5 = scmp.ge.s32.totalorder %s601_s16, 1 }
  0x10   : > { %p681_p6 = por %p106_p3, %p53_p0  ;;  %p113_p7 = scmp.lt.s32.totalorder %s601_s16, 5 }
  0x11   : > { %s876_s21 = scalar_select %p676_p4, 1, 0 }
  0x12   : > { %s877_s22 = scalar_select %p681_p6, 1, 0 }
  0x13   : > { %p686_p8 = pnand %p331_p5, %p113_p7  ;;  %s603_s24 = smov [#allocation5]  }
  0x14   : > { %878 = sst [smem:[#allocation11_spill]] %s877_s22  ;;  %s126_s25 = sshll.u32 %s603_s24, 4  ;;  %s127_s25 = int_to_ptr.vmem [resolvable:$true] %s126_s25 }
  0x15   : > { %s879_s23 = scalar_select %p686_p8, 1, 0 }
  0x16   : > { %p354_p9 = pneg %p686_p8  ;;  %s28_s27 = sadd.s32 1, %s593_s14 }
  0x17   : > { %s881_s1 = sld [smem:[#allocation13_spill]] }
  0x18   : > { %p694_p10 = pnand %p354_p9, %p666_p1 }
  0x1a   : > { %p443_p12 = pneg %p694_p10 }
  0x1d   : > { %s441_s30 = scalar_lea.hbm %s881_s1, 64 }
  0x1e   : > { %p442_p11 = scmp.ne.s32.totalorder %s881_s1, %s441_s30  ;;  %p448_p3 = scmp.lt.u32.totalorder %s441_s30, %s881_s1 }
  0x20   : > { %p444_p13 = pnand %p443_p12, %p442_p11 }
  0x22   : > { %p445_p0 = pneg %p444_p13 }
  0x24   : > { %p450_p5 = pnand %p448_p3, %p445_p0 }
  0x26   : > { %453 = shalt.err (!%p450_p5)
}
  0x27   : > { %s454_s7 = scalar_lea.vmem %s127_s25, 64  ;;  %p462_p1 = scmp.lt.s32.totalorder %s127_s25, %s127_s25 }
  0x28   : > { %p455_p7 = scmp.ne.s32.totalorder %s127_s25, %s454_s7  ;;  %p463_p4 = scmp.lt.s32.totalorder %s454_s7, %s454_s7 }
  0x2a   : > { %p457_p9 = pnand %p455_p7, %p443_p12  ;;  %p464_p8 = por %p463_p4, %p462_p1 }
  0x2c   : > { %p458_p6 = pneg %p457_p9 }
  0x2e   : > { %p465_p2 = pnand %p464_p8, %p458_p6 }
  0x30   : > { %468 = shalt.err (!%p465_p2)
}
  0x31   : > { %357 = dma.hbm_to_vmem [thread:$0]  (!%p694_p10), %s881_s1, 64, %s127_s25, [#allocation6]  }
  0x32   : > { %p29_p1 = scmp.ge.s32.totalorder %s28_s27, 2  ;;  %s31_s18 = sadd.s32 1, %s597_s15 }
  0x33   : > { %s40_s24 = sadd.s32 1, %s581_s11  ;;  %p47_p2 = scmp.ne.s32.totalorder %s581_s11, %s577_s10 }
  0x34   : > { %s901_s27 = smov (%p29_p1, %s28_s27), 0  ;;  %s903_s18 = smov (!%p29_p1, %s31_s18), %s597_s15 }
  0x35   : > { %882 = sst [smem:[#allocation12_spill]] %s901_s27  ;;  %s36_s26 = ssub.s32 %s593_s14, %s901_s27 }
  0x36   : > { %p48_p4 = scmp.eq.s32.totalorder %s601_s16, 0  ;;  %p33_p6 = scmp.ge.s32.totalorder %s903_s18, 2 }
  0x37   : > { %p883_p8 = scmp.ne.s32.totalorder %s875_s20, 0  ;;  %p367_p12 = scmp.lt.s32.totalorder %s601_s16, 4 }
  0x38   : > { %p731_p10 = por %p48_p4, %p47_p2  ;;  %s905_s18 = smov (%p33_p6, %s903_s18), 0 }
  0x39   : > { %p727_p11 = por %p883_p8, %p47_p2  ;;  %s137_s29 = sand.u32 1, %s581_s11  }
  0x3a   : > { %s335_s30 = sshll.u32 %s597_s15, 1  ;;  %s35_s3 = ssub.s32 %s597_s15, %s905_s18 }
  0x3b   : > { %s37_s4 = sor.u32 %s36_s26, %s35_s3  ;;  %s334_s5 = sshll.u32 %s137_s29, 2 }
  0x3c   : > { %p38_p13 = scmp.eq.s32.totalorder %s37_s4, 0  ;;  %s146_s20 = sadd.s32 %s593_s14, %s335_s30 }
  0x3d   : > { %s141_s6 = scalar_lea.vmem [#allocation2], %s334_s5  ;;  %s336_s17 = sshll.u32 %s146_s20, 6 }
  0x3e   : > { %s150_s7 = sshll.u32 %s141_s6, 4  ;;  %s751_s22 = scalar_lea.hbm %s864_s0, %s336_s17  ;;  %s746_s7 = int_to_ptr.vmem [resolvable:$true] %s150_s7 }
  0x3f   : > { %s744_s8 = scalar_select %p38_p13, %s581_s11, %s40_s24  }
  0x40   : > { %p757_p0 = pnand %p367_p12, %p731_p10  ;;  %s138_s24 = scalar_lea.sflag [#allocation3], %s137_s29 }
  0x41   : > { %s469_s30 = scalar_lea.hbm %s751_s22, 64  ;;  %s474_s25 = scalar_lea.hbm %s864_s0, 256 }
  0x42   : > { %p470_p3 = scmp.ne.s32.totalorder %s751_s22, %s469_s30  ;;  %p471_p5 = pneg %p757_p0 }
  0x43   : > { %p475_p1 = scmp.lt.u32.totalorder %s751_s22, %s864_s0  ;;  %p476_p2 = scmp.lt.u32.totalorder %s474_s25, %s469_s30 }
  0x44   : > { %p472_p7 = pnand %p471_p5, %p470_p3  ;;  %p478_p6 = scmp.lt.u32.totalorder %s469_s30, %s751_s22 }
  0x45   : > { %p477_p4 = por %p476_p2, %p475_p1 }
  0x46   : > { %p473_p9 = pneg %p472_p7 }
  0x47   : > { %p479_p8 = por %p478_p6, %p477_p4 }
  0x49   : > { %p480_p10 = pnand %p479_p8, %p473_p9 }
  0x4b   : > { %483 = shalt.err (!%p480_p10)
}
  0x4c   : > { %s484_s29 = scalar_lea.vmem %s746_s7, 64  ;;  %s604_s5 = smov [#allocation2]  }
  0x4d   : > { %p485_p12 = scmp.ne.s32.totalorder %s746_s7, %s484_s29  ;;  %s489_s20 = sshll.u32 %s604_s5, 4  ;;  %s490_s20 = int_to_ptr.vmem [resolvable:$false] %s489_s20 }
  0x4e   : > { %s491_s6 = scalar_lea.vmem %s490_s20, 128  ;;  %p492_p7 = scmp.lt.s32.totalorder %s746_s7, %s490_s20 }
  0x4f   : > { %p487_p13 = pnand %p485_p12, %p471_p5  ;;  %p493_p1 = scmp.lt.s32.totalorder %s491_s6, %s484_s29 }
  0x51   : > { %p488_p3 = pneg %p487_p13  ;;  %p494_p2 = por %p493_p1, %p492_p7 }
  0x53   : > { %p495_p4 = pnand %p494_p2, %p488_p3 }
  0x55   : > { %498 = shalt.err (!%p495_p4)
}
  0x56   : > { %361 = dma.hbm_to_vmem [thread:$0]  (!%p757_p0), %s751_s22, 64, %s746_s7, %s138_s24  }
  0x57   : > { %p887_p9 = scmp.ne.s32.totalorder %s879_s23, 0 }
  0x58   : > { %s789_s17 = sand.u32 (!%p887_p9), 1, %s577_s10   ;;  %p888_p5 = scmp.ne.s32.totalorder (!%p887_p9), %s876_s21, 0 }
  0x59   : > { %159 = sbr.rel (%p887_p9) target bundleno = 246 (0xf6), region = 28  ;;  %s338_s30 = sshll.u32 (!%p887_p9), %s789_s17, 2 }
  0x5a   : > { %s162_s1 = scalar_lea.sflag (!%p887_p9), [#allocation3], %s789_s17  ;;  %s165_s27 = scalar_lea.vmem (!%p887_p9), [#allocation2], %s338_s30 }
  0x60   : > { %560 = dma.done.wait (%p888_p5), %s162_s1, 64  }
  0x61   : > { %562 = vsyncadd (%p888_p5), %s162_s1, 4294967232  ;;  %p889_p0 = scmp.ne.s32.totalorder %s874_s19, 0 }
  0x63   : > { %564 = dma.done.wait (%p889_p0), [#allocation6], 64  }
  0x64   : > { %566 = vsyncadd (%p889_p0), [#allocation6], 4294967232  ;;  %v605_v0 = vmov 0   ;;  %v209_v1 = vld [vmem:[#allocation5] sm:$0xf]  ;;  %vm192_vm0 = vcmask 1043456  }
  0x65   : > { %436 = vset.pattern.permute.xlu0 %v605_v0  ;;  %v190_v2 = vld [vmem:[%s165_s27] sm:$0xf]  ;;  %s342_s19 = sshll.u32 %s589_s13, 1  ;;  %s189_s23 = scalar_lea.vmem [#allocation7], %s338_s30 }
  0x66   : > { %213 = vperm.xlu0 %436, %v209_v1   ;;  %v191_v3 = vmul.f32 %v190_v2, %v190_v2  ;;  %s230_s21 = sadd.s32 %s585_s12, %s342_s19  ;;  %s234_s7 = sshll.u32 %s189_s23, 4  ;;  %s812_s7 = int_to_ptr.vmem [resolvable:$true] %s234_s7 }
  0x67   : > { %s343_s22 = sshll.u32 %s230_s21, 6  ;;  %s219_s13 = scalar_lea.sflag [#allocation4], %s789_s17 }
  0x68   : > { %v193_v4 = vsel %vm192_vm0, %v191_v3, 0.0  ;;  %s810_s25 = scalar_lea.hbm %s866_s2, %s343_s22  ;;  %s499_s12 = scalar_lea.vmem %s812_s7, 64 }
  0x69   : > { %v194_v5 = vrot.slane %v193_v4, 4  ;;  %p500_p6 = scmp.ne.s32.totalorder %s812_s7, %s499_s12  ;;  %s606_s3 = smov [#allocation7]  }
  0x6a   : > { %s503_s4 = sshll.u32 %s606_s3, 4  ;;  %s504_s4 = int_to_ptr.vmem [resolvable:$false] %s503_s4 }
  0x6b   : > { %v195_v6 = vadd.f32 %v194_v5, %v193_v4  ;;  %p501_p8 = pnand %p500_p6, %p727_p11  ;;  %s505_s29 = scalar_lea.vmem %s504_s4, 128 }
  0x6c   : > { %p506_p12 = scmp.lt.s32.totalorder %s812_s7, %s504_s4  ;;  %p507_p13 = scmp.lt.s32.totalorder %s505_s29, %s499_s12 }
  0x6d   : > { %v196_v7 = vrot.slane %v195_v6, 2  ;;  %p502_p10 = pneg %p501_p8 }
  0x6e   : > { %p508_p3 = por %p507_p13, %p506_p12 }
  0x6f   : > { %v197_v8 = vadd.f32 %v196_v7, %v195_v6 }
  0x70   : > { %p509_p7 = pnand %p508_p3, %p502_p10 }
  0x71   : > { %v198_v9 = vrot.slane %v197_v8, 1 }
  0x73   : > { %v199_v10 = vadd.f32 %v198_v9, %v197_v8 }
  0x75   : > { %437 = vrsqrt.f32 %v199_v10  ;;  %vm202_vm1 = vcmp.eq.f32.partialorder %v199_v10, inf  ;;  %v205_v13 = vand.u32 2147483648, %v199_v10  ;;  %vm204_vm2 = vcmp.eq.f32.partialorder %v199_v10, 0.0 }
  0x7f   : > { %v438_v11 = vpop.eup %437 }
  0x80   : > { %v201_v12 = vmul.f32 %v438_v11, %v199_v10 }
  0x82   : > { %v203_v14 = vsel %vm202_vm1, %v199_v10, %v201_v12 }
  0x83   : > { %v206_v15 = vsel %vm204_vm2, %v205_v13, %v203_v14 }
  0x84   : > { %v207_v16 = vadd.f32 1e-10, %v206_v15 }
  0x86   : > { %439 = vrcp.f32 %v207_v16 }
  0x90   : > { %v440_v17 = vpop.eup %439 }
  0x91   : > { %v210_v18 = vmul.f32 %v440_v17, %v190_v2 }
  0xe5   : > { %v214_v19 = vpop.permute.xlu0 %213 }
  0xe6   : > { %v216_v20 = vmul.f32 %v214_v19, %v210_v18 }
  0xe8   : > { %217 = vst [vmem:[%s189_s23] sm:$0xf] %v216_v20 }
  0xe9   : > { %512 = shalt.err (!%p509_p7)
}
  0xea   : > { %s513_s5 = scalar_lea.hbm %s810_s25, 64  ;;  %s517_s17 = scalar_lea.hbm %s866_s2, 256 }
  0xeb   : > { %p514_p1 = scmp.ne.s32.totalorder %s810_s25, %s513_s5  ;;  %p518_p9 = scmp.lt.u32.totalorder %s810_s25, %s866_s2 }
  0xec   : > { %p519_p5 = scmp.lt.u32.totalorder %s517_s17, %s513_s5  ;;  %p521_p6 = scmp.lt.u32.totalorder %s513_s5, %s810_s25 }
  0xed   : > { %p515_p2 = pnand %p514_p1, %p727_p11 }
  0xee   : > { %p520_p0 = por %p519_p5, %p518_p9 }
  0xef   : > { %p516_p4 = pneg %p515_p2 }
  0xf0   : > { %p522_p8 = por %p521_p6, %p520_p0 }
  0xf2   : > { %p523_p10 = pnand %p522_p8, %p516_p4 }
  0xf4   : > { %526 = shalt.err (!%p523_p10)
}
  0xf5   : > { %352 = dma.vmem_to_hbm [thread:$0]  (%p727_p11), %s812_s7, 64, %s810_s25, %s219_s13  }
  0xf6 PF: > { %s890_s27 = sld [smem:[#allocation11_spill]]  ;;  %p369_p12 = scmp.ge.s32.totalorder %s601_s16, 2 }
  0xf7   : > { %s246_s19 = sand.u32 1, %s573_s9  }
  0xf8   : > { %s247_s21 = scalar_lea.sflag [#allocation4], %s246_s19 }
  0xfc   : > { %p891_p13 = scmp.ne.s32.totalorder %s890_s27, 0 }
  0xfe   : > { %p363_p3 = pnand %p369_p12, %p891_p13 }
 0x100   : > { %568 = dma.done.wait (!%p363_p3), %s247_s21, 64  }
 0x101   : > { %570 = vsyncadd (!%p363_p3), %s247_s21, 4294967232  ;;  %s19_s16 = sadd.s32 1, %s601_s16   ;;  %s892_s28 = sld [smem:[#allocation12_spill]] }
 0x102   : > { %p16_p7 = scmp.ge.s32.totalorder %s19_s16, 6   ;;  %s893_s9 = smov %s577_s10 }
 0x103   : > { %s894_s10 = smov %s581_s11  ;;  %s895_s11 = smov %s744_s8 }
 0x104   : > { %s896_s12 = smov %s593_s14  ;;  %s897_s13 = smov %s597_s15 }
 0x105   : > { %s899_s15 = smov %s905_s18  ;;  %18 = sbr.rel (!%p16_p7) target bundleno = 10 (0xa), region = 77 }
 0x107   : > { %s898_s14 = smov %s892_s28 }
 0x10c   :  { %252 = vsyncpa [#allocation3], 1 }
 0x10d   :  { %254 = vsyncpa [#allocation3 + $0x1], 1 }
 0x10e   :  { %255 = vsyncpa [#allocation6], 1 }
 0x10f   :  { %256 = vsyncpa [#allocation4], 1 }
 0x110   :  { %258 = vsyncpa [#allocation4 + $0x1], 1 }

</bundles_post_ra>
